<compile_context>
chip_gen: v7x
topology: tpu7x:2x2x1
jax: 0.10.0
libtpu: 0.0.40
codegen_flags: <defaults>
</compile_context>

<pallas_src>
import functools
import math

import jax
import jax.numpy as jnp
from jax.experimental import pallas as pl
from jax.experimental.pallas import tpu as pltpu


def _round_up(x: int, m: int) -> int:
    return ((x + m - 1) // m) * m


# ---------------- Pallas kernels ----------------

def node_mlp_kernel(x_ref, w1_ref, b1_ref, w2_ref, b2_ref, out_ref):
    """scalar_message_mlp: Linear(F->F) -> SiLU -> Linear(F->3F).
    The 3F output is written as three lane-dense F-wide slabs: out_ref is [3, TN, F]."""
    x = x_ref[...]
    h = jnp.dot(x, w1_ref[...], preferred_element_type=jnp.float32) + b1_ref[...]
    h = h * (1.0 / (1.0 + jnp.exp(-h)))                      # SiLU (exp -> EUP slot)
    for k in range(3):                                       # gate_state / gate_edge / msg slabs
        out_ref[k, :, :] = (jnp.dot(h, w2_ref[k], preferred_element_type=jnp.float32)
                            + b2_ref[k])


def edge_message_kernel(dist_ref, diff_ref, sout_ref, vec_ref, wf_ref, bf_ref,
                        msg_s_ref, msg_v_ref, *, num_basis, cutoff):
    """Per-edge-tile message: sine radial basis + filter linear + cosine cutoff + gating.

    dist [TE,1], diff [TE,3], sout/vec [3,TE,F], wf [3,B,F], bf [3,1,F]
    -> msg_s [TE,F], msg_v [3,TE,F]  (all F-wide, lane-dense, unmasked stores for F%128==0).
    """
    d = dist_ref[...]                                        # [TE, 1]
    te = d.shape[0]
    # One reciprocal, reused for rbf and the unit vector (same zero-length-edge
    # behaviour as the reference: d == 0 would produce inf/nan there too).
    inv_d = pl.reciprocal(d, approx=False)                   # exact: keeps 1e-4 tolerance

    freq = math.pi / cutoff
    n = jax.lax.broadcasted_iota(jnp.float32, (te, num_basis), 1) + 1.0
    rbf = jnp.sin(n * (freq * d)) * inv_d                    # [TE, B]

    fc = 0.5 * (jnp.cos(d * freq) + 1.0)                     # CosineCutoff
    fc = jnp.where(d < cutoff, fc, 0.0)                      # [TE, 1] (zeroes padded edges too)

    # Three separate F-wide filter slabs (no unaligned slicing of a [TE, 3F] block).
    gate_state = (jnp.dot(rbf, wf_ref[0], preferred_element_type=jnp.float32)
                  + bf_ref[0]) * fc * sout_ref[0]            # [TE, F]
    gate_edge = (jnp.dot(rbf, wf_ref[1], preferred_element_type=jnp.float32)
                 + bf_ref[1]) * fc * sout_ref[1]             # [TE, F]
    msg_s_ref[...] = (jnp.dot(rbf, wf_ref[2], preferred_element_type=jnp.float32)
                      + bf_ref[2]) * fc * sout_ref[2]        # message_scalar [TE, F]

    unit = diff_ref[...] * inv_d                             # [TE, 3]
    for k in range(3):                                       # per spatial component
        msg_v_ref[k, :, :] = vec_ref[k] * gate_state + gate_edge * unit[:, k:k + 1]


# ---------------- wrapper ----------------

def painn_message(edge, edge_dist, edge_diff, node_scalar, node_vector, params,
                  *, cutoff, num_basis, node_tile=256, edge_tile=1024):
    # edge_tile=1024 keeps the per-tile working set ~10 MB double-buffered at F=128,
    # comfortably inside v7x's 64 MiB VMEM; shrink on v5e if the single vector-store
    # slot becomes the bottleneck.
    N, F = node_scalar.shape
    E = edge.shape[0]
    B = num_basis

    cparams = pltpu.CompilerParams(
        dimension_semantics=("parallel",),        # shard grid across v7x's 2 TCs
        vmem_limit_bytes=32 * 1024 * 1024,
    )

    # ---- node MLP: tiled over node rows, weights resident across grid steps ----
    TN = min(node_tile, _round_up(N, 8))
    N_pad = _round_up(N, TN)
    x = node_scalar if N_pad == N else jnp.pad(node_scalar, ((0, N_pad - N), (0, 0)))

    w2_3 = params["w2"].reshape(F, 3, F).transpose(1, 0, 2)   # [3, F, F]
    b2_3 = params["b2"].reshape(1, 3, F).transpose(1, 0, 2)   # [3, 1, F]

    scalar_out = pl.pallas_call(
        node_mlp_kernel,
        out_shape=jax.ShapeDtypeStruct((3, N_pad, F), jnp.float32),
        grid=(N_pad // TN,),
        in_specs=[
            pl.BlockSpec((TN, F), lambda i: (i, 0)),
            pl.BlockSpec((F, F), lambda i: (0, 0)),           # w1 resident
            pl.BlockSpec((1, F), lambda i: (0, 0)),           # b1 resident
            pl.BlockSpec((3, F, F), lambda i: (0, 0, 0)),     # w2 resident
            pl.BlockSpec((3, 1, F), lambda i: (0, 0, 0)),     # b2 resident
        ],
        out_specs=pl.BlockSpec((3, TN, F), lambda i: (0, i, 0)),
        compiler_params=cparams,
    )(x, params["w1"], params["b1"], w2_3, b2_3)

    # ---- edge padding: pad ONLY the cheap per-edge arrays (indices / dist / diff).
    # Padded edges: d = 2*cutoff -> cosine cutoff == 0 -> messages are exactly zero;
    # padded send/recv index 0 only gathers a valid row / adds zeros in the scatter.
    TE = min(edge_tile, _round_up(E, 8))
    E_pad = _round_up(E, TE)
    recv = edge[:, 0]
    send = edge[:, 1]
    dist2 = edge_dist[:, None]                                # [E, 1]
    diff = edge_diff
    if E_pad != E:
        pe = E_pad - E
        send = jnp.pad(send, (0, pe))
        recv = jnp.pad(recv, (0, pe))
        dist2 = jnp.pad(dist2, ((0, pe), (0, 0)), constant_values=2.0 * cutoff)
        diff = jnp.pad(diff, ((0, pe), (0, 0)), constant_values=1.0)

    # Per-sender row gathers (N-sized tables -> E_pad-sized slabs), produced directly in
    # the [3, E_pad, F] layout the edge kernel consumes (no post-gather transpose over E,
    # no jnp.pad round-trip of the big E-sized arrays).
    # TODO(synk): fuse these gathers into the edge kernel (scalar-prefetched `send`
    # + per-tile DMA row gather); left in XLA since an arbitrary-index vectorized row
    # gather has no simple portable Mosaic form.
    nv_t = jnp.transpose(node_vector, (1, 0, 2))              # [3, N, F] (N-sized, cheap)
    sout_j = scalar_out[:, send, :]                           # [3, E_pad, F]
    vec_j = nv_t[:, send, :]                                  # [3, E_pad, F]

    wf_3 = params["wf"].reshape(B, 3, F).transpose(1, 0, 2)   # [3, B, F]
    bf_3 = params["bf"].reshape(1, 3, F).transpose(1, 0, 2)   # [3, 1, F]

    kernel = functools.partial(edge_message_kernel, num_basis=B, cutoff=cutoff)
    msg_s, msg_v = pl.pallas_call(
        kernel,
        out_shape=(jax.ShapeDtypeStruct((E_pad, F), jnp.float32),
                   jax.ShapeDtypeStruct((3, E_pad, F), jnp.float32)),
        grid=(E_pad // TE,),
        in_specs=[
            pl.BlockSpec((TE, 1), lambda e: (e, 0)),
            pl.BlockSpec((TE, 3), lambda e: (e, 0)),
            pl.BlockSpec((3, TE, F), lambda e: (0, e, 0)),
            pl.BlockSpec((3, TE, F), lambda e: (0, e, 0)),
            pl.BlockSpec((3, B, F), lambda e: (0, 0, 0)),     # wf resident
            pl.BlockSpec((3, 1, F), lambda e: (0, 0, 0)),     # bf resident
        ],
        out_specs=(pl.BlockSpec((TE, F), lambda e: (e, 0)),
                   pl.BlockSpec((3, TE, F), lambda e: (0, e, 0))),
        compiler_params=cparams,
    )(dist2, diff, sout_j, vec_j, wf_3, bf_3)

    # Scatter-add in the [3, N, F] layout (transpose only the N-sized result, never the
    # E-sized messages). Padded edges contribute exact zeros to row 0.
    # TODO(synk): index_add_ scatter left in XLA; a per-edge dynamic scatter-add has no
    # clean vectorized Pallas TPU form.
    new_scalar = node_scalar.at[recv].add(msg_s)
    new_vector = jnp.transpose(nv_t.at[:, recv, :].add(msg_v), (1, 0, 2))
    return new_scalar, new_vector


# ---------------- pure-JAX reference ----------------

def painn_message_ref(edge, edge_dist, edge_diff, node_scalar, node_vector, params,
                      *, cutoff, num_basis):
    d = edge_dist[:, None]
    n = jnp.arange(1, num_basis + 1, dtype=jnp.float32)[None, :]
    rbf = jnp.sin(n * math.pi * d / cutoff) / d
    filt = rbf @ params["wf"] + params["bf"]
    fc = jnp.where(d < cutoff, 0.5 * (jnp.cos(math.pi * d / cutoff) + 1.0), 0.0)
    filter_weight = filt * fc

    h = node_scalar @ params["w1"] + params["b1"]
    h = h * jax.nn.sigmoid(h)
    scalar_out = h @ params["w2"] + params["b2"]

    send, recv = edge[:, 1], edge[:, 0]
    filter_out = filter_weight * scalar_out[send]
    gate_state, gate_edge, msg_s = jnp.split(filter_out, 3, axis=1)
    msg_v = (node_vector[send] * gate_state[:, None, :]
             + gate_edge[:, None, :] * (edge_diff / d)[:, :, None])

    rs = jnp.zeros_like(node_scalar).at[recv].add(msg_s)
    rv = jnp.zeros_like(node_vector).at[recv].add(msg_v)
    return node_scalar + rs, node_vector + rv


# ---------------- params ----------------

def init_params(key, F, B):
    k1, k2, k3, k4, k5, k6 = jax.random.split(key, 6)
    s1 = 1.0 / math.sqrt(F)
    sf = 1.0 / math.sqrt(B)
    return dict(
        w1=jax.random.uniform(k1, (F, F), jnp.float32, -s1, s1),
        b1=jax.random.uniform(k2, (1, F), jnp.float32, -s1, s1),
        w2=jax.random.uniform(k3, (F, 3 * F), jnp.float32, -s1, s1),
        b2=jax.random.uniform(k4, (1, 3 * F), jnp.float32, -s1, s1),
        wf=jax.random.uniform(k5, (B, 3 * F), jnp.float32, -sf, sf),
        bf=jax.random.uniform(k6, (1, 3 * F), jnp.float32, -sf, sf),
    )


if __name__ == "__main__":
    key = jax.random.PRNGKey(0)
    # Small but lane-dense: F=128 keeps every kernel load/store unmasked; E is not a
    # multiple of the edge tile to exercise the padded-edge path, and the small tiles
    # below force multi-step grids through both pipelines.
    N, E, F, B = 64, 200, 128, 16
    cutoff = 5.0

    kp, ke, kd, ks, kv = jax.random.split(key, 5)
    params = init_params(kp, F, B)
    edge = jax.random.randint(ke, (E, 2), 0, N, dtype=jnp.int32)
    edge_diff = jax.random.normal(kd, (E, 3), jnp.float32) * 1.5
    edge_dist = jnp.linalg.norm(edge_diff, axis=-1)
    node_scalar = jax.random.normal(ks, (N, F), jnp.float32)
    node_vector = jax.random.normal(kv, (N, 3, F), jnp.float32)

    new_s, new_v = painn_message(edge, edge_dist, edge_diff, node_scalar, node_vector,
                                 params, cutoff=cutoff, num_basis=B,
                                 node_tile=32, edge_tile=64)
    jax.block_until_ready((new_s, new_v))

    ref_s, ref_v = painn_message_ref(edge, edge_dist, edge_diff, node_scalar, node_vector,
                                     params, cutoff=cutoff, num_basis=B)
    assert new_s.shape == (N, F) and new_v.shape == (N, 3, F)
    assert jnp.allclose(new_s, ref_s, atol=1e-4, rtol=1e-4)
    assert jnp.allclose(new_v, ref_v, atol=1e-4, rtol=1e-4)
    print("KERNEL_OK")
</pallas_src>

<mosaic_0001>
module attributes {stable_mosaic.version = 11 : i64} {
  func.func @node_mlp_kernel(%arg0: i32, %arg1: memref<32x128xf32, #tpu.memory_space<vmem>>, %arg2: memref<128x128xf32, #tpu.memory_space<vmem>>, %arg3: memref<1x128xf32, #tpu.memory_space<vmem>>, %arg4: memref<3x128x128xf32, #tpu.memory_space<vmem>>, %arg5: memref<3x1x128xf32, #tpu.memory_space<vmem>>, %arg6: memref<3x32x128xf32, #tpu.memory_space<vmem>>) attributes {dimension_semantics = [#tpu.dimension_semantics<parallel>], iteration_bounds = array<i64: 2>, scalar_prefetch = 0 : i64, scratch_operands = 0 : i64, tpu.core_type = #tpu.core_type<tc>, window_params = [{transform_indices = @transform_0, window_bounds = array<i64: 32, 128>}, {pipeline_mode = #tpu.pipeline_mode<synchronous>, transform_indices = @transform_1, window_bounds = array<i64: 128, 128>}, {pipeline_mode = #tpu.pipeline_mode<synchronous>, transform_indices = @transform_2, window_bounds = array<i64: 1, 128>}, {pipeline_mode = #tpu.pipeline_mode<synchronous>, transform_indices = @transform_3, window_bounds = array<i64: 3, 128, 128>}, {pipeline_mode = #tpu.pipeline_mode<synchronous>, transform_indices = @transform_4, window_bounds = array<i64: 3, 1, 128>}, {transform_indices = @transform_5, window_bounds = array<i64: 3, 32, 128>}]} {
    %c0 = arith.constant 0 : index
    %c0_0 = arith.constant 0 : index
    %0 = vector.load %arg1[%c0, %c0_0] : memref<32x128xf32, #tpu.memory_space<vmem>>, vector<32x128xf32>
    %c0_1 = arith.constant 0 : index
    %c0_2 = arith.constant 0 : index
    %1 = vector.load %arg2[%c0_1, %c0_2] : memref<128x128xf32, #tpu.memory_space<vmem>>, vector<128x128xf32>
    %cst = arith.constant dense<0.000000e+00> : vector<32x128xf32>
    %2 = tpu.matmul %0, %1, %cst {dimension_numbers = #tpu.dot_dimension_numbers<[1], [0], [0], [1], [0, 0, 1, 1], [], []>} : vector<32x128xf32>, vector<128x128xf32>, vector<32x128xf32> -> vector<32x128xf32>
    %c0_3 = arith.constant 0 : index
    %c0_4 = arith.constant 0 : index
    %3 = vector.load %arg3[%c0_3, %c0_4] : memref<1x128xf32, #tpu.memory_space<vmem>>, vector<1x128xf32>
    %4 = vector.broadcast %3 : vector<1x128xf32> to vector<32x128xf32>
    %5 = arith.addf %2, %4 : vector<32x128xf32>
    %cst_5 = arith.constant 0.000000e+00 : f32
    %6 = vector.broadcast %cst_5 : f32 to vector<32x128xf32>
    %7 = arith.subf %6, %5 : vector<32x128xf32>
    %8 = math.exp %7 : vector<32x128xf32>
    %cst_6 = arith.constant 1.000000e+00 : f32
    %9 = vector.broadcast %cst_6 : f32 to vector<32x128xf32>
    %10 = arith.addf %9, %8 : vector<32x128xf32>
    %cst_7 = arith.constant 1.000000e+00 : f32
    %11 = vector.broadcast %cst_7 : f32 to vector<32x128xf32>
    %12 = arith.divf %11, %10 : vector<32x128xf32>
    %13 = arith.mulf %5, %12 : vector<32x128xf32>
    %c0_8 = arith.constant 0 : index
    %c0_9 = arith.constant 0 : index
    %c0_10 = arith.constant 0 : index
    %14 = vector.load %arg4[%c0_8, %c0_9, %c0_10] : memref<3x128x128xf32, #tpu.memory_space<vmem>>, vector<1x128x128xf32>
    %15 = vector.shape_cast %14 : vector<1x128x128xf32> to vector<128x128xf32>
    %cst_11 = arith.constant dense<0.000000e+00> : vector<32x128xf32>
    %16 = tpu.matmul %13, %15, %cst_11 {dimension_numbers = #tpu.dot_dimension_numbers<[1], [0], [0], [1], [0, 0, 1, 1], [], []>} : vector<32x128xf32>, vector<128x128xf32>, vector<32x128xf32> -> vector<32x128xf32>
    %c0_12 = arith.constant 0 : index
    %c0_13 = arith.constant 0 : index
    %c0_14 = arith.constant 0 : index
    %17 = vector.load %arg5[%c0_12, %c0_13, %c0_14] : memref<3x1x128xf32, #tpu.memory_space<vmem>>, vector<1x1x128xf32>
    %18 = vector.shape_cast %17 : vector<1x1x128xf32> to vector<1x128xf32>
    %19 = vector.broadcast %18 : vector<1x128xf32> to vector<32x128xf32>
    %20 = arith.addf %16, %19 : vector<32x128xf32>
    %c0_15 = arith.constant 0 : index
    %c0_16 = arith.constant 0 : index
    %c0_17 = arith.constant 0 : index
    %21 = vector.load %arg6[%c0_15, %c0_16, %c0_17] : memref<3x32x128xf32, #tpu.memory_space<vmem>>, vector<1x32x128xf32>
    %22 = vector.shape_cast %21 : vector<1x32x128xf32> to vector<32x128xf32>
    %23 = vector.shape_cast %20 : vector<32x128xf32> to vector<1x32x128xf32>
    tpu.vector_store %arg6[%c0_15, %c0_16, %c0_17], %23 {strides = array<i32>} : memref<3x32x128xf32, #tpu.memory_space<vmem>>, vector<1x32x128xf32>,
    %c1 = arith.constant 1 : index
    %c0_18 = arith.constant 0 : index
    %c0_19 = arith.constant 0 : index
    %24 = vector.load %arg4[%c1, %c0_18, %c0_19] : memref<3x128x128xf32, #tpu.memory_space<vmem>>, vector<1x128x128xf32>
    %25 = vector.shape_cast %24 : vector<1x128x128xf32> to vector<128x128xf32>
    %cst_20 = arith.constant dense<0.000000e+00> : vector<32x128xf32>
    %26 = tpu.matmul %13, %25, %cst_20 {dimension_numbers = #tpu.dot_dimension_numbers<[1], [0], [0], [1], [0, 0, 1, 1], [], []>} : vector<32x128xf32>, vector<128x128xf32>, vector<32x128xf32> -> vector<32x128xf32>
    %c1_21 = arith.constant 1 : index
    %c0_22 = arith.constant 0 : index
    %c0_23 = arith.constant 0 : index
    %27 = vector.load %arg5[%c1_21, %c0_22, %c0_23] : memref<3x1x128xf32, #tpu.memory_space<vmem>>, vector<1x1x128xf32>
    %28 = vector.shape_cast %27 : vector<1x1x128xf32> to vector<1x128xf32>
    %29 = vector.broadcast %28 : vector<1x128xf32> to vector<32x128xf32>
    %30 = arith.addf %26, %29 : vector<32x128xf32>
    %c1_24 = arith.constant 1 : index
    %c0_25 = arith.constant 0 : index
    %c0_26 = arith.constant 0 : index
    %31 = vector.load %arg6[%c1_24, %c0_25, %c0_26] : memref<3x32x128xf32, #tpu.memory_space<vmem>>, vector<1x32x128xf32>
    %32 = vector.shape_cast %31 : vector<1x32x128xf32> to vector<32x128xf32>
    %33 = vector.shape_cast %30 : vector<32x128xf32> to vector<1x32x128xf32>
    tpu.vector_store %arg6[%c1_24, %c0_25, %c0_26], %33 {strides = array<i32>} : memref<3x32x128xf32, #tpu.memory_space<vmem>>, vector<1x32x128xf32>,
    %c2 = arith.constant 2 : index
    %c0_27 = arith.constant 0 : index
    %c0_28 = arith.constant 0 : index
    %34 = vector.load %arg4[%c2, %c0_27, %c0_28] : memref<3x128x128xf32, #tpu.memory_space<vmem>>, vector<1x128x128xf32>
    %35 = vector.shape_cast %34 : vector<1x128x128xf32> to vector<128x128xf32>
    %cst_29 = arith.constant dense<0.000000e+00> : vector<32x128xf32>
    %36 = tpu.matmul %13, %35, %cst_29 {dimension_numbers = #tpu.dot_dimension_numbers<[1], [0], [0], [1], [0, 0, 1, 1], [], []>} : vector<32x128xf32>, vector<128x128xf32>, vector<32x128xf32> -> vector<32x128xf32>
    %c2_30 = arith.constant 2 : index
    %c0_31 = arith.constant 0 : index
    %c0_32 = arith.constant 0 : index
    %37 = vector.load %arg5[%c2_30, %c0_31, %c0_32] : memref<3x1x128xf32, #tpu.memory_space<vmem>>, vector<1x1x128xf32>
    %38 = vector.shape_cast %37 : vector<1x1x128xf32> to vector<1x128xf32>
    %39 = vector.broadcast %38 : vector<1x128xf32> to vector<32x128xf32>
    %40 = arith.addf %36, %39 : vector<32x128xf32>
    %c2_33 = arith.constant 2 : index
    %c0_34 = arith.constant 0 : index
    %c0_35 = arith.constant 0 : index
    %41 = vector.load %arg6[%c2_33, %c0_34, %c0_35] : memref<3x32x128xf32, #tpu.memory_space<vmem>>, vector<1x32x128xf32>
    %42 = vector.shape_cast %41 : vector<1x32x128xf32> to vector<32x128xf32>
    %43 = vector.shape_cast %40 : vector<32x128xf32> to vector<1x32x128xf32>
    tpu.vector_store %arg6[%c2_33, %c0_34, %c0_35], %43 {strides = array<i32>} : memref<3x32x128xf32, #tpu.memory_space<vmem>>, vector<1x32x128xf32>,
    return
  }
  func.func @transform_0(%arg0: i32) -> (i32, i32) {
    %c0_i32 = arith.constant 0 : i32
    %c0_i32_0 = arith.constant 0 : i32
    return %arg0, %c0_i32 : i32, i32
  }
  func.func @transform_1(%arg0: i32) -> (i32, i32) {
    %c0_i32 = arith.constant 0 : i32
    %c0_i32_0 = arith.constant 0 : i32
    %c0_i32_1 = arith.constant 0 : i32
    return %c0_i32, %c0_i32_0 : i32, i32
  }
  func.func @transform_2(%arg0: i32) -> (i32, i32) {
    %c0_i32 = arith.constant 0 : i32
    %c0_i32_0 = arith.constant 0 : i32
    %c0_i32_1 = arith.constant 0 : i32
    return %c0_i32, %c0_i32_0 : i32, i32
  }
  func.func @transform_3(%arg0: i32) -> (i32, i32, i32) {
    %c0_i32 = arith.constant 0 : i32
    %c0_i32_0 = arith.constant 0 : i32
    %c0_i32_1 = arith.constant 0 : i32
    %c0_i32_2 = arith.constant 0 : i32
    return %c0_i32, %c0_i32_0, %c0_i32_1 : i32, i32, i32
  }
  func.func @transform_4(%arg0: i32) -> (i32, i32, i32) {
    %c0_i32 = arith.constant 0 : i32
    %c0_i32_0 = arith.constant 0 : i32
    %c0_i32_1 = arith.constant 0 : i32
    %c0_i32_2 = arith.constant 0 : i32
    return %c0_i32, %c0_i32_0, %c0_i32_1 : i32, i32, i32
  }
  func.func @transform_5(%arg0: i32) -> (i32, i32, i32) {
    %c0_i32 = arith.constant 0 : i32
    %c0_i32_0 = arith.constant 0 : i32
    %c0_i32_1 = arith.constant 0 : i32
    return %c0_i32, %arg0, %c0_i32_0 : i32, i32, i32
  }
}

</mosaic_0001>

<bundles_post_ra>
// kernel: tpu_custom_call.1
= control target key start
LH: loop header
LB: loop body
LE: loop exit
PB: predicated region body
PF: predicated region fallthrough
CT: control target
= control target key end

     0   :  { %10 = vsyncpa [#allocation3], 0  ;;  %s1818_s0 = inlined_call_operand.hbm [shape: f32[64,128], index: 0, kind: input, shape index: {}]   ;;  %s1819_s1 = inlined_call_operand.hbm [shape: f32[128,128], index: 1, kind: input, shape index: {}]   ;;  %s1820_s2 = inlined_call_operand.vmem [shape: f32[1,128], index: 2, kind: input, shape index: {}]   ;;  %s1821_s3 = inlined_call_operand.hbm [shape: f32[3,128,128], index: 3, kind: input, shape index: {}]   ;;  %s1822_s4 = inlined_call_operand.vmem [shape: f32[3,1,128], index: 4, kind: input, shape index: {}]   ;;  %s1823_s5 = inlined_call_operand.hbm [shape: f32[3,64,128], index: 5, kind: output, shape index: {}]  }
   0x1   :  { %12 = vsyncpa [#allocation3 + $0x1], 0 }
   0x2   :  { %13 = vsyncpa [#allocation6], 0 }
   0x3   :  { %14 = vsyncpa [#allocation4], 0 }
   0x4   :  { %16 = vsyncpa [#allocation4 + $0x1], 0  ;;  %s1554_s18 = smov 0   ;;  %s1556_s19 = smov 0  }
   0x5   :  { %s1558_s20 = smov 0   ;;  %s1560_s21 = smov 0  }
   0x6 LB: > { %s1575_s22 = sadd.s32 4294967295, %s1510_s21   ;;  %s891_s23 = sadd.s32 4294967294, %s1510_s21   ;;  %s1510_s21 = sphi %s1560_s21, %s1843_s21   ;;  %s1506_s20 = sphi %s1558_s20, %s1842_s20   ;;  %s1502_s19 = sphi %s1556_s19, %s1841_s19   ;;  %s1498_s18 = sphi %s1554_s18, %s1840_s18  }
   0x7   : > { %p42_p0 = scmp.ne.s32.totalorder %s1502_s19, %s1498_s18  ;;  %p1824_p1 = scmp.eq.s32.totalorder %s1575_s22, 0 }
   0x8   : > { %p156_p3 = scmp.eq.s32.totalorder %s891_s23, 1  ;;  %p892_p5 = scmp.ge.s32.totalorder %s1510_s21, 1 }
   0x9   : > { %p1584_p4 = por %p1824_p1, %p42_p0  ;;  %p163_p7 = scmp.lt.s32.totalorder %s1510_s21, 3 }
   0xa   : > { %p1589_p6 = por %p156_p3, %p42_p0  ;;  %s1512_s27 = smov [#allocation5]  }
   0xb   : > { %s1827_s24 = scalar_select %p1584_p4, 1, 0 }
   0xc   : > { %s1828_s25 = scalar_select %p1589_p6, 1, 0 }
   0xd   : > { %p1594_p8 = pnand %p892_p5, %p163_p7  ;;  %s175_s28 = sshll.u32 %s1512_s27, 4  ;;  %s1598_s28 = int_to_ptr.vmem [resolvable:$true] %s175_s28 }
   0xe   : > { %s1513_s30 = smov [#allocation7]   ;;  %s1382_s9 = scalar_lea.hbm %s1819_s1, 2048 }
   0xf   : > { %p1302_p9 = pneg %p1594_p8  ;;  %s191_s6 = sshll.u32 %s1513_s30, 4  ;;  %s1609_s6 = int_to_ptr.vmem [resolvable:$true] %s191_s6 }
  0x10   : > { %p1383_p12 = scmp.ne.s32.totalorder %s1819_s1, %s1382_s9  ;;  %p1389_p5 = scmp.lt.u32.totalorder %s1382_s9, %s1819_s1 }
  0x11   : > { %p1605_p11 = pnand %p1302_p9, %p1824_p1 }
  0x13   : > { %p1384_p13 = pneg %p1605_p11 }
  0x15   : > { %p1385_p0 = pnand %p1384_p13, %p1383_p12 }
  0x17   : > { %p1386_p3 = pneg %p1385_p0 }
  0x19   : > { %p1391_p7 = pnand %p1389_p5, %p1386_p3 }
  0x1b   : > { %1394 = shalt.err (!%p1391_p7)
}
  0x1c   : > { %s1395_s14 = scalar_lea.vmem %s1598_s28, 2048  ;;  %p1403_p2 = scmp.lt.s32.totalorder %s1598_s28, %s1598_s28 }
  0x1d   : > { %p1396_p9 = scmp.ne.s32.totalorder %s1598_s28, %s1395_s14  ;;  %p1404_p12 = scmp.lt.s32.totalorder %s1395_s14, %s1395_s14 }
  0x1f   : > { %p1398_p10 = pnand %p1396_p9, %p1384_p13  ;;  %p1405_p0 = por %p1404_p12, %p1403_p2 }
  0x21   : > { %p1399_p1 = pneg %p1398_p10 }
  0x23   : > { %p1406_p6 = pnand %p1405_p0, %p1399_p1 }
  0x25   : > { %1409 = shalt.err (!%p1406_p6)
}
  0x26   : > { %s1514_s15 = smov 128   ;;  %s1515_s16 = smov 8  }
  0x27   : > { %1305 = dma.hbm_to_vmem [thread:$0]  (!%p1605_p11), %s1819_s1, 2048, %s1598_s28, [#allocation6], %s1514_s15, %s1514_s15, %s1515_s16  }
  0x28   : > { %s1410_s7 = scalar_lea.hbm %s1821_s3, 6144 }
  0x29   : > { %p1411_p1 = scmp.ne.s32.totalorder %s1821_s3, %s1410_s7  ;;  %p1417_p10 = scmp.lt.u32.totalorder %s1410_s7, %s1821_s3 }
  0x2b   : > { %p1413_p2 = pnand %p1411_p1, %p1384_p13 }
  0x2d   : > { %p1414_p6 = pneg %p1413_p2 }
  0x2f   : > { %p1419_p3 = pnand %p1417_p10, %p1414_p6 }
  0x31   : > { %1422 = shalt.err (!%p1419_p3)
}
  0x32   : > { %s1423_s28 = scalar_lea.vmem %s1609_s6, 6144  ;;  %p1431_p12 = scmp.lt.s32.totalorder %s1609_s6, %s1609_s6 }
  0x33   : > { %p1424_p5 = scmp.ne.s32.totalorder %s1609_s6, %s1423_s28  ;;  %p1432_p0 = scmp.lt.s32.totalorder %s1423_s28, %s1423_s28 }
  0x35   : > { %p1426_p7 = pnand %p1424_p5, %p1384_p13  ;;  %p1433_p1 = por %p1432_p0, %p1431_p12 }
  0x37   : > { %p1427_p9 = pneg %p1426_p7 }
  0x39   : > { %p1434_p2 = pnand %p1433_p1, %p1427_p9 }
  0x3b   : > { %1437 = shalt.err (!%p1434_p2)
}
  0x3c   : > { %1308 = dma.hbm_to_vmem [thread:$0]  (!%p1605_p11), %s1821_s3, 6144, %s1609_s6, [#allocation6], %s1514_s15, %s1514_s15, %s1515_s16  }
  0x3d   : > { %s1670_s29 = sadd.s32 1, %s1510_s21   ;;  %s29_s14 = sadd.s32 1, %s1506_s20 }
  0x3e   : > { %s26_s17 = ssub.s32 %s1510_s21, %s1670_s29  ;;  %p36_p13 = scmp.ne.s32.totalorder %s1506_s20, %s1502_s19 }
  0x3f   : > { %p27_p6 = scmp.eq.s32.totalorder %s26_s17, 0  ;;  %p37_p10 = scmp.eq.s32.totalorder %s1510_s21, 0 }
  0x40   : > { %p1831_p3 = scmp.eq.s32.totalorder %s1575_s22, 1  ;;  %p1319_p7 = scmp.lt.s32.totalorder %s1510_s21, 2 }
  0x41   : > { %s1686_s27 = scalar_select %p27_p6, %s1506_s20, %s29_s14  }
  0x42   : > { %p1680_p5 = por %p1831_p3, %p36_p13  ;;  %p38_p9 = por %p37_p10, %p36_p13 }
  0x43   : > { %s208_s30 = sand.u32 1, %s1506_s20   ;;  %s921_s6 = sshll.u32 %s1510_s21, 9 }
  0x44   : > { %s1832_s23 = scalar_select %p1680_p5, 1, 0 }
  0x45   : > { %s896_s7 = sshll.u32 %s208_s30, 5  ;;  %s1693_s10 = scalar_lea.hbm %s1818_s0, %s921_s6 }
  0x46   : > { %s212_s11 = scalar_lea.vmem [#allocation2], %s896_s7  ;;  %p1697_p11 = pnand %p1319_p7, %p38_p9 }
  0x47   : > { %s219_s28 = sshll.u32 %s212_s11, 4  ;;  %s1701_s13 = scalar_lea.sflag [#allocation3], %s208_s30  ;;  %s1695_s28 = int_to_ptr.vmem [resolvable:$true] %s219_s28 }
  0x48   : > { %s1438_s14 = scalar_lea.hbm %s1693_s10, 512  ;;  %p1440_p0 = pneg %p1697_p11 }
  0x49   : > { %p1439_p12 = scmp.ne.s32.totalorder %s1693_s10, %s1438_s14  ;;  %s1443_s6 = scalar_lea.hbm %s1818_s0, 1024 }
  0x4a   : > { %p1444_p13 = scmp.lt.u32.totalorder %s1693_s10, %s1818_s0  ;;  %p1445_p6 = scmp.lt.u32.totalorder %s1443_s6, %s1438_s14 }
  0x4b   : > { %p1441_p1 = pnand %p1440_p0, %p1439_p12  ;;  %p1447_p3 = scmp.lt.u32.totalorder %s1438_s14, %s1693_s10 }
  0x4c   : > { %p1446_p10 = por %p1445_p6, %p1444_p13 }
  0x4d   : > { %p1442_p2 = pneg %p1441_p1 }
  0x4e   : > { %p1448_p7 = por %p1447_p3, %p1446_p10 }
  0x50   : > { %p1449_p9 = pnand %p1448_p7, %p1442_p2 }
  0x52   : > { %1452 = shalt.err (!%p1449_p9)
}
  0x53   : > { %s1453_s30 = scalar_lea.vmem %s1695_s28, 512  ;;  %s1516_s11 = smov [#allocation2]  }
  0x54   : > { %p1454_p12 = scmp.ne.s32.totalorder %s1695_s28, %s1453_s30  ;;  %s1458_s17 = sshll.u32 %s1516_s11, 4  ;;  %s1459_s17 = int_to_ptr.vmem [resolvable:$false] %s1458_s17 }
  0x55   : > { %s1460_s7 = scalar_lea.vmem %s1459_s17, 1024  ;;  %p1461_p4 = scmp.lt.s32.totalorder %s1695_s28, %s1459_s17 }
  0x56   : > { %p1456_p1 = pnand %p1454_p12, %p1440_p0  ;;  %p1462_p13 = scmp.lt.s32.totalorder %s1460_s7, %s1453_s30 }
  0x58   : > { %p1457_p5 = pneg %p1456_p1  ;;  %p1463_p6 = por %p1462_p13, %p1461_p4 }
  0x5a   : > { %p1464_p10 = pnand %p1463_p6, %p1457_p5 }
  0x5c   : > { %1467 = shalt.err (!%p1464_p10)
}
  0x5d   : > { %1312 = dma.hbm_to_vmem [thread:$0]  (!%p1697_p11), %s1693_s10, 512, %s1695_s28, %s1701_s13, %s1514_s15, %s1514_s15, %s1515_s16  }
  0x5e   : > { %231 = sbr.rel (%p1594_p8) target bundleno = 649 (0x289), region = 40  ;;  %s1735_s14 = sand.u32 (!%p1594_p8), 1, %s1502_s19  }
  0x5f   : > { %s900_s6 = sshll.u32 (!%p1594_p8), %s1735_s14, 5  ;;  %s234_s8 = scalar_lea.sflag (!%p1594_p8), [#allocation3], %s1735_s14 }
  0x60   : > { %s1739_s9 = scalar_lea.vmem (!%p1594_p8), [#allocation2], %s900_s6  ;;  %p1834_p4 = scmp.ne.s32.totalorder (!%p1594_p8), %s1827_s24, 0 }
  0x65   : > { %1485 = dma.done.wait (%p1834_p4), %s234_s8, 512  }
  0x66   : > { %1487 = vsyncadd (%p1834_p4), %s234_s8, 4294966784  ;;  %p1835_p5 = scmp.eq.s32.totalorder %s1575_s22, 0 }
  0x68   : > { %1489 = dma.done.wait (%p1835_p5), [#allocation6], 8192   ;;  %p1836_p8 = pmov %p1835_p5 }
  0x69   : > { %v278_v0 = vld [vmem:[#allocation5] sm:$0xff]  ;;  %v279_v1 = vld [vmem:[#allocation5 + $0x8] sm:$0xff]  ;;  %v280_v2 = vld [vmem:[#allocation5 + $0x10] sm:$0xff]  ;;  %s1283_s15 = smul.u32 96, %s1735_s14  ;;  %s757_s17 = scalar_lea.sflag [#allocation4], %s1735_s14 }
  0x6a   : > { %1491 = vsyncadd (%p1836_p8), [#allocation6], 4294959104  ;;  %v1155_v3 = vpack.c.bf16 %v279_v1, %v278_v0  ;;  %v281_v4 = vld [vmem:[#allocation5 + $0x18] sm:$0xff]  ;;  %v282_v6 = vld [vmem:[#allocation5 + $0x20] sm:$0xff] }
  0x6b   : > { %v1159_v5 = vpack.c.bf16 %v281_v4, %v280_v2  ;;  %v283_v7 = vld [vmem:[#allocation5 + $0x28] sm:$0xff]  ;;  %v274_v9 = vld [vmem:[%s1739_s9] sm:$0xff]  ;;  %v284_v10 = vld [vmem:[#allocation5 + $0x30] sm:$0xff]  ;;  %s1763_s13 = scalar_lea.vmem [#allocation8], %s1283_s15 }
  0x6c   : > { %1156 = vmatprep.subr.bf16.mxu0 %v1155_v3  ;;  %v1163_v8 = vpack.c.bf16 %v283_v7, %v282_v6  ;;  %v285_v11 = vld [vmem:[#allocation5 + $0x38] sm:$0xff]  ;;  %1035 = vmatprep.mubr.f32.mxu0 %v274_v9  ;;  %v286_v13 = vld [vmem:[#allocation5 + $0x40] sm:$0xff]  ;;  %v287_v14 = vld [vmem:[#allocation5 + $0x48] sm:$0xff] }
  0x6d   : > { %1158 = vmatpush3.bf16.msra.mxu0 %v1155_v3  ;;  %v1167_v12 = vpack.c.bf16 %v285_v11, %v284_v10  ;;  %v1171_v15 = vpack.c.bf16 %v287_v14, %v286_v13  ;;  %v288_v16 = vld [vmem:[#allocation5 + $0x50] sm:$0xff]  ;;  %v289_v17 = vld [vmem:[#allocation5 + $0x58] sm:$0xff]  ;;  %v290_v19 = vld [vmem:[#allocation5 + $0x60] sm:$0xff] }
  0x6e   : > { %1160 = vmatprep.subr.bf16.mxu0 %v1159_v5  ;;  %v1175_v18 = vpack.c.bf16 %v289_v17, %v288_v16  ;;  %v291_v20 = vld [vmem:[#allocation5 + $0x68] sm:$0xff]  ;;  %v292_v22 = vld [vmem:[#allocation5 + $0x70] sm:$0xff]  ;;  %v293_v23 = vld [vmem:[#allocation5 + $0x78] sm:$0xff] }
  0x6f   : > { %v1179_v21 = vpack.c.bf16 %v291_v20, %v290_v19  ;;  %v1183_v24 = vpack.c.bf16 %v293_v23, %v292_v22  ;;  %v275_v25 = vld [vmem:[%s1739_s9 + $0x8] sm:$0xff]  ;;  %v276_v26 = vld [vmem:[%s1739_s9 + $0x10] sm:$0xff]  ;;  %v277_v27 = vld [vmem:[%s1739_s9 + $0x18] sm:$0xff] }
  0x70   : > { %v414_v28 = vld [vmem:[#allocation7] sm:$0xff]  ;;  %v415_v29 = vld [vmem:[#allocation7 + $0x8] sm:$0xff]  ;;  %v416_v34 = vld [vmem:[#allocation7 + $0x10] sm:$0xff] }
  0x71   : > { %1162 = vmatpush3.bf16.msra.mxu0 %v1159_v5  ;;  %v1187_v30 = vpack.c.bf16 %v415_v29, %v414_v28  ;;  %v527_v31 = vld [vmem:[#allocation7 + $0x80] sm:$0xff]  ;;  %v528_v32 = vld [vmem:[#allocation7 + $0x88] sm:$0xff]  ;;  %v417_v35 = vld [vmem:[#allocation7 + $0x18] sm:$0xff] }
  0x72   : > { %1164 = vmatprep.subr.bf16.mxu0 %v1163_v8  ;;  %v1219_v33 = vpack.c.bf16 %v528_v32, %v527_v31  ;;  %v1191_v36 = vpack.c.bf16 %v417_v35, %v416_v34  ;;  %v529_v37 = vld [vmem:[#allocation7 + $0x90] sm:$0xff]  ;;  %v530_v38 = vld [vmem:[#allocation7 + $0x98] sm:$0xff]  ;;  %v418_v40 = vld [vmem:[#allocation7 + $0x20] sm:$0xff] }
  0x73   : > { %1188 = vmatprep.subr.bf16.mxu1 %v1187_v30  ;;  %v1223_v39 = vpack.c.bf16 %v530_v38, %v529_v37  ;;  %v419_v41 = vld [vmem:[#allocation7 + $0x28] sm:$0xff]  ;;  %v531_v43 = vld [vmem:[#allocation7 + $0xa0] sm:$0xff]  ;;  %v420_v46 = vld [vmem:[#allocation7 + $0x30] sm:$0xff] }
  0x74   : > { %1190 = vmatpush3.bf16.msra.mxu1 %v1187_v30  ;;  %v1195_v42 = vpack.c.bf16 %v419_v41, %v418_v40  ;;  %v532_v44 = vld [vmem:[#allocation7 + $0xa8] sm:$0xff]  ;;  %v421_v47 = vld [vmem:[#allocation7 + $0x38] sm:$0xff]  ;;  %v533_v49 = vld [vmem:[#allocation7 + $0xb0] sm:$0xff] }
  0x75   : > { %1166 = vmatpush3.bf16.msra.mxu0 %v1163_v8  ;;  %1192 = vmatprep.subr.bf16.mxu1 %v1191_v36  ;;  %v1227_v45 = vpack.c.bf16 %v532_v44, %v531_v43  ;;  %v1199_v48 = vpack.c.bf16 %v421_v47, %v420_v46  ;;  %v534_v50 = vld [vmem:[#allocation7 + $0xb8] sm:$0xff]  ;;  %v422_v52 = vld [vmem:[#allocation7 + $0x40] sm:$0xff]  ;;  %v423_v53 = vld [vmem:[#allocation7 + $0x48] sm:$0xff] }
  0x76   : > { %1168 = vmatprep.subr.bf16.mxu0 %v1167_v12  ;;  %v1231_v51 = vpack.c.bf16 %v534_v50, %v533_v49  ;;  %v1203_v54 = vpack.c.bf16 %v423_v53, %v422_v52  ;;  %v535_v55 = vld [vmem:[#allocation7 + $0xc0] sm:$0xff]  ;;  %v536_v56 = vld [vmem:[#allocation7 + $0xc8] sm:$0xff]  ;;  %v424_v58 = vld [vmem:[#allocation7 + $0x50] sm:$0xff] }
  0x77   : > { %v1235_v57 = vpack.c.bf16 %v536_v56, %v535_v55  ;;  %v425_v59 = vld [vmem:[#allocation7 + $0x58] sm:$0xff]  ;;  %v537_v61 = vld [vmem:[#allocation7 + $0xd0] sm:$0xff]  ;;  %v426_v0 = vld [vmem:[#allocation7 + $0x60] sm:$0xff] }
  0x78   : > { %1194 = vmatpush3.bf16.msra.mxu1 %v1191_v36  ;;  %v1207_v60 = vpack.c.bf16 %v425_v59, %v424_v58  ;;  %v538_v62 = vld [vmem:[#allocation7 + $0xd8] sm:$0xff]  ;;  %v427_v1 = vld [vmem:[#allocation7 + $0x68] sm:$0xff]  ;;  %v539_v3 = vld [vmem:[#allocation7 + $0xe0] sm:$0xff] }
  0x79   : > { %1170 = vmatpush3.bf16.msra.mxu0 %v1167_v12  ;;  %1196 = vmatprep.subr.bf16.mxu1 %v1195_v42  ;;  %v1239_v63 = vpack.c.bf16 %v538_v62, %v537_v61  ;;  %v1211_v2 = vpack.c.bf16 %v427_v1, %v426_v0  ;;  %v540_v4 = vld [vmem:[#allocation7 + $0xe8] sm:$0xff]  ;;  %v428_v6 = vld [vmem:[#allocation7 + $0x70] sm:$0xff]  ;;  %v429_v7 = vld [vmem:[#allocation7 + $0x78] sm:$0xff] }
  0x7a   : > { %1172 = vmatprep.subr.bf16.mxu0 %v1171_v15  ;;  %v1243_v5 = vpack.c.bf16 %v540_v4, %v539_v3  ;;  %v1215_v8 = vpack.c.bf16 %v429_v7, %v428_v6  ;;  %v541_v9 = vld [vmem:[#allocation7 + $0xf0] sm:$0xff]  ;;  %v542_v10 = vld [vmem:[#allocation7 + $0xf8] sm:$0xff]  ;;  %v642_v12 = vld [vmem:[#allocation7 + $0x100] sm:$0xff] }
  0x7b   : > { %v1247_v11 = vpack.c.bf16 %v542_v10, %v541_v9  ;;  %v643_v13 = vld [vmem:[#allocation7 + $0x108] sm:$0xff]  ;;  %v644_v41 = vld [vmem:[#allocation7 + $0x110] sm:$0xff]  ;;  %v649_v55 = vld [vmem:[#allocation7 + $0x138] sm:$0xff] }
  0x7c   : > { %1198 = vmatpush3.bf16.msra.mxu1 %v1195_v42  ;;  %v1251_v14 = vpack.c.bf16 %v643_v13, %v642_v12  ;;  %v645_v42 = vld [vmem:[#allocation7 + $0x118] sm:$0xff]  ;;  %v647_v49 = vld [vmem:[#allocation7 + $0x128] sm:$0xff]  ;;  %v906_v6 = vld [vmem:[%s1822_s4 + $0x1] ss:$0 sm:$0xff] }
  0x7d   : > { %1174 = vmatpush3.bf16.msra.mxu0 %v1171_v15  ;;  %1200 = vmatprep.subr.bf16.mxu1 %v1199_v48  ;;  %v903_v15 = vld [vmem:[%s1820_s2] ss:$0 sm:$0xff]  ;;  %v1255_v46 = vpack.c.bf16 %v645_v42, %v644_v41  ;;  %v651_v58 = vld [vmem:[#allocation7 + $0x148] sm:$0xff]  ;;  %v653_v61 = vld [vmem:[#allocation7 + $0x158] sm:$0xff] }
  0x7e   : > { %1176 = vmatprep.subr.bf16.mxu0 %v1175_v18  ;;  %v655_v0 = vld [vmem:[#allocation7 + $0x168] sm:$0xff]  ;;  %v657_v3 = vld [vmem:[#allocation7 + $0x178] sm:$0xff] }
  0x80   : > { %1202 = vmatpush3.bf16.msra.mxu1 %v1199_v48  ;;  %v646_v48 = vld [vmem:[#allocation7 + $0x120] sm:$0xff] }
  0x81   : > { %1178 = vmatpush3.bf16.msra.mxu0 %v1175_v18  ;;  %1204 = vmatprep.subr.bf16.mxu1 %v1203_v54  ;;  %v1259_v53 = vpack.c.bf16 %v647_v49, %v646_v48 }
  0x82   : > { %1180 = vmatprep.subr.bf16.mxu0 %v1179_v21 }
  0x84   : > { %1206 = vmatpush3.bf16.msra.mxu1 %v1203_v54  ;;  %v648_v54 = vld [vmem:[#allocation7 + $0x130] sm:$0xff] }
  0x85   : > { %1182 = vmatpush3.bf16.msra.mxu0 %v1179_v21  ;;  %1208 = vmatprep.subr.bf16.mxu1 %v1207_v60  ;;  %v1263_v56 = vpack.c.bf16 %v649_v55, %v648_v54 }
  0x86   : > { %1184 = vmatprep.subr.bf16.mxu0 %v1183_v24 }
  0x88   : > { %1210 = vmatpush3.bf16.msra.mxu1 %v1207_v60  ;;  %v652_v60 = vld [vmem:[#allocation7 + $0x150] sm:$0xff] }
  0x89   : > { %1186 = vmatpush3.bf16.msra.mxu0 %v1183_v24  ;;  %1212 = vmatprep.subr.bf16.mxu1 %v1211_v2  ;;  %v1271_v62 = vpack.c.bf16 %v653_v61, %v652_v60 }
  0x8a   : > { %1220 = vmatprep.subr.bf16.mxu0 %v1219_v33 }
  0x8c   : > { %1036 = vmatmul.mubr.f32.vlgmr.msra.gmra.mrb[0].mxu0 %v275_v25  ;;  %1214 = vmatpush3.bf16.msra.mxu1 %v1211_v2  ;;  %v656_v2 = vld [vmem:[#allocation7 + $0x170] sm:$0xff] }
  0x8d   : > { %1038 = vmatprep.mubr.f32.mxu0 %v276_v26  ;;  %1222 = vmatpush3.bf16.msra.mxu0 %v1219_v33  ;;  %v1279_v4 = vpack.c.bf16 %v657_v3, %v656_v2 }
  0x8e   : > { %1224 = vmatprep.subr.bf16.mxu0 %v1223_v39  ;;  %1216 = vmatprep.subr.bf16.mxu1 %v1215_v8 }
  0x90   : > { %1039 = vmatmul.mubr.f32.gmra.mrb[2].mxu0 %v277_v27  ;;  %1218 = vmatpush3.bf16.msra.mxu1 %v1215_v8 }
  0x91   : > { %1226 = vmatpush3.bf16.msra.mxu0 %v1223_v39  ;;  %1252 = vmatprep.subr.bf16.mxu1 %v1251_v14 }
  0x92   : > { %1228 = vmatprep.subr.bf16.mxu0 %v1227_v45 }
  0x95   : > { %1230 = vmatpush3.bf16.msra.mxu0 %v1227_v45 }
  0x96   : > { %1232 = vmatprep.subr.bf16.mxu0 %v1231_v51 }
  0x99   : > { %1234 = vmatpush3.bf16.msra.mxu0 %v1231_v51 }
  0x9a   : > { %1236 = vmatprep.subr.bf16.mxu0 %v1235_v57 }
  0x9d   : > { %1238 = vmatpush3.bf16.msra.mxu0 %v1235_v57  ;;  %v650_v57 = vld [vmem:[#allocation7 + $0x140] sm:$0xff] }
  0x9e   : > { %1240 = vmatprep.subr.bf16.mxu0 %v1239_v63  ;;  %v1267_v59 = vpack.c.bf16 %v651_v58, %v650_v57 }
  0xa1   : > { %1242 = vmatpush3.bf16.msra.mxu0 %v1239_v63  ;;  %v654_v63 = vld [vmem:[#allocation7 + $0x160] sm:$0xff] }
  0xa2   : > { %1244 = vmatprep.subr.bf16.mxu0 %v1243_v5  ;;  %v1275_v1 = vpack.c.bf16 %v655_v0, %v654_v63 }
  0xa5   : > { %1246 = vmatpush3.bf16.msra.mxu0 %v1243_v5  ;;  %v904_v5 = vld [vmem:[%s1822_s4] ss:$0 sm:$0xff] }
  0xa6   : > { %1248 = vmatprep.subr.bf16.mxu0 %v1247_v11 }
  0xa9   : > { %1250 = vmatpush3.bf16.msra.mxu0 %v1247_v11 }
 0x15f   : > { %v1037_v16 = vpop.f32.mrb[0].mxu0 }
 0x160   : > { %v373_v17 = vadd.f32 %v1037_v16, %v903_v15  ;;  %v367_v18 = vpop.f32.mrb[1].mxu0 }
 0x161   : > { %v368_v19 = vadd.f32 %v903_v15, %v367_v18 }
 0x162   : > { %v387_v20 = vsub.f32 0.0, %v373_v17 }
 0x163   : > { %v386_v21 = vsub.f32 0.0, %v368_v19  ;;  %v1040_v22 = vpop.f32.mrb[2].mxu0 }
 0x164   : > { %v392_v23 = vmul.f32 1.442695, %v387_v20  ;;  %v383_v24 = vadd.f32 %v1040_v22, %v903_v15  ;;  %v377_v25 = vpop.f32.mrb[3].mxu0 }
 0x165   : > { %v390_v26 = vmul.f32 1.442695, %v386_v21  ;;  %v378_v27 = vadd.f32 %v903_v15, %v377_v25 }
 0x166   : > { %1366 = vpow2.f32 %v392_v23  ;;  %v389_v28 = vsub.f32 0.0, %v383_v24  ;;  %v912_v23 = vld [vmem:[%s1822_s4 + $0x2] ss:$0 sm:$0xff] }
 0x167   : > { %1368 = vpow2.f32 %v390_v26  ;;  %v388_v29 = vsub.f32 0.0, %v378_v27 }
 0x168   : > { %v396_v30 = vmul.f32 1.442695, %v389_v28 }
 0x169   : > { %v394_v31 = vmul.f32 1.442695, %v388_v29 }
 0x16a   : > { %1370 = vpow2.f32 %v396_v30 }
 0x16b   : > { %1372 = vpow2.f32 %v394_v31 }
 0x170   : > { %v1367_v32 = vpop.eup %1366 }
 0x171   : > { %v1369_v33 = vpop.eup %1368  ;;  %v399_v34 = vadd.f32 1.0, %v1367_v32 }
 0x172   : > { %v398_v35 = vadd.f32 1.0, %v1369_v33 }
 0x173   : > { %1374 = vrcp.f32 %v399_v34 }
 0x174   : > { %v1371_v36 = vpop.eup %1370  ;;  %1376 = vrcp.f32 %v398_v35 }
 0x175   : > { %v1373_v37 = vpop.eup %1372  ;;  %v401_v38 = vadd.f32 1.0, %v1371_v36 }
 0x176   : > { %v400_v39 = vadd.f32 1.0, %v1373_v37 }
 0x177   : > { %1378 = vrcp.f32 %v401_v38 }
 0x178   : > { %1380 = vrcp.f32 %v400_v39 }
 0x17d   : > { %v1375_v40 = vpop.eup %1374 }
 0x17e   : > { %v1377_v43 = vpop.eup %1376  ;;  %v411_v45 = vmul.f32 %v1375_v40, %v373_v17 }
 0x17f   : > { %v410_v44 = vmul.f32 %v1377_v43, %v368_v19 }
 0x181   : > { %v1379_v47 = vpop.eup %1378  ;;  %1073 = vmatprep.mubr.f32.mxu1 %v410_v44  ;;  %1111 = vmatprep.mubr.f32.mxu0 %v410_v44 }
 0x182   : > { %v1381_v50 = vpop.eup %1380  ;;  %1074 = vmatmul.mubr.f32.vlgmr.msra.gmra.mrb[0].mxu1 %v411_v45  ;;  %1112 = vmatmul.mubr.f32.vlgmr.msra.gmra.mrb[4].mxu0 %v411_v45  ;;  %v413_v52 = vmul.f32 %v1379_v47, %v383_v24 }
 0x183   : > { %v412_v51 = vmul.f32 %v1381_v50, %v378_v27  ;;  %1254 = vmatpush3.bf16.msra.mxu1 %v1251_v14 }
 0x184   : > { %1256 = vmatprep.subr.bf16.mxu1 %v1255_v46 }
 0x185   : > { %1076 = vmatprep.mubr.f32.mxu1 %v412_v51  ;;  %1114 = vmatprep.mubr.f32.mxu0 %v412_v51 }
 0x186   : > { %1077 = vmatmul.mubr.f32.gmra.mrb[2].mxu1 %v413_v52  ;;  %1115 = vmatmul.mubr.f32.gmra.mrb[6].mxu0 %v413_v52 }
 0x187   : > { %1258 = vmatpush3.bf16.msra.mxu1 %v1255_v46  ;;  %1149 = vmatprep.mubr.f32.mxu1 %v410_v44 }
 0x188   : > { %1260 = vmatprep.subr.bf16.mxu1 %v1259_v53 }
 0x18b   : > { %1262 = vmatpush3.bf16.msra.mxu1 %v1259_v53 }
 0x18c   : > { %1264 = vmatprep.subr.bf16.mxu1 %v1263_v56 }
 0x18f   : > { %1266 = vmatpush3.bf16.msra.mxu1 %v1263_v56 }
 0x190   : > { %1268 = vmatprep.subr.bf16.mxu1 %v1267_v59 }
 0x193   : > { %1270 = vmatpush3.bf16.msra.mxu1 %v1267_v59 }
 0x194   : > { %1272 = vmatprep.subr.bf16.mxu1 %v1271_v62 }
 0x197   : > { %1274 = vmatpush3.bf16.msra.mxu1 %v1271_v62 }
 0x198   : > { %1276 = vmatprep.subr.bf16.mxu1 %v1275_v1 }
 0x19b   : > { %1278 = vmatpush3.bf16.msra.mxu1 %v1275_v1 }
 0x19c   : > { %1280 = vmatprep.subr.bf16.mxu1 %v1279_v4 }
 0x19f   : > { %1282 = vmatpush3.bf16.msra.mxu1 %v1279_v4 }
 0x1a2   : > { %1150 = vmatmul.mubr.f32.vlgmr.msra.gmra.mrb[4].mxu1 %v411_v45 }
 0x1a3   : > { %1152 = vmatprep.mubr.f32.mxu1 %v412_v51 }
 0x1a6   : > { %1153 = vmatmul.mubr.f32.gmra.mrb[6].mxu1 %v413_v52 }
 0x255   : > { %v1075_v7 = vpop.f32.mrb[0].mxu1  ;;  %v1113_v8 = vpop.f32.mrb[4].mxu0 }
 0x256   : > { %v509_v9 = vadd.f32 %v1075_v7, %v904_v5  ;;  %v623_v10 = vadd.f32 %v1113_v8, %v906_v6  ;;  %v503_v11 = vpop.f32.mrb[1].mxu1  ;;  %v617_v12 = vpop.f32.mrb[5].mxu0 }
 0x257   : > { %v504_v13 = vadd.f32 %v904_v5, %v503_v11  ;;  %v618_v14 = vadd.f32 %v906_v6, %v617_v12 }
 0x258   : > { %523 = vst [vmem:[%s1763_s13 + $0x8] sm:$0xff] %v509_v9  ;;  %908 = vst [vmem:[%s1763_s13 + $0x28] sm:$0xff] %v623_v10 }
 0x259   : > { %522 = vst [vmem:[%s1763_s13] sm:$0xff] %v504_v13  ;;  %907 = vst [vmem:[%s1763_s13 + $0x20] sm:$0xff] %v618_v14  ;;  %v1078_v15 = vpop.f32.mrb[2].mxu1  ;;  %v1116_v16 = vpop.f32.mrb[6].mxu0 }
 0x25a   : > { %v519_v17 = vadd.f32 %v1078_v15, %v904_v5  ;;  %v633_v18 = vadd.f32 %v1116_v16, %v906_v6  ;;  %v513_v19 = vpop.f32.mrb[3].mxu1  ;;  %v627_v20 = vpop.f32.mrb[7].mxu0 }
 0x25b   : > { %v514_v21 = vadd.f32 %v904_v5, %v513_v19  ;;  %v628_v22 = vadd.f32 %v906_v6, %v627_v20 }
 0x25c   : > { %525 = vst [vmem:[%s1763_s13 + $0x18] sm:$0xff] %v519_v17  ;;  %910 = vst [vmem:[%s1763_s13 + $0x38] sm:$0xff] %v633_v18 }
 0x25d   : > { %524 = vst [vmem:[%s1763_s13 + $0x10] sm:$0xff] %v514_v21  ;;  %909 = vst [vmem:[%s1763_s13 + $0x30] sm:$0xff] %v628_v22 }
 0x275   : > { %v1151_v24 = vpop.f32.mrb[4].mxu1 }
 0x276   : > { %v738_v25 = vadd.f32 %v1151_v24, %v912_v23  ;;  %v732_v26 = vpop.f32.mrb[5].mxu1 }
 0x277   : > { %v733_v27 = vadd.f32 %v912_v23, %v732_v26 }
 0x278   : > { %914 = vst [vmem:[%s1763_s13 + $0x48] sm:$0xff] %v738_v25 }
 0x279   : > { %913 = vst [vmem:[%s1763_s13 + $0x40] sm:$0xff] %v733_v27  ;;  %v1154_v28 = vpop.f32.mrb[6].mxu1 }
 0x27a   : > { %v748_v29 = vadd.f32 %v1154_v28, %v912_v23  ;;  %v742_v30 = vpop.f32.mrb[7].mxu1 }
 0x27b   : > { %v743_v31 = vadd.f32 %v912_v23, %v742_v30 }
 0x27c   : > { %916 = vst [vmem:[%s1763_s13 + $0x58] sm:$0xff] %v748_v29 }
 0x27d   : > { %915 = vst [vmem:[%s1763_s13 + $0x50] sm:$0xff] %v743_v31 }
 0x27e   : > { %s922_s7 = sshll.u32 %s1575_s22, 9  ;;  %s786_s6 = sshll.u32 %s1763_s13, 4  ;;  %s787_s6 = int_to_ptr.vmem [resolvable:$true] %s786_s6 }
 0x27f   : > { %s769_s24 = scalar_lea.hbm %s1823_s5, %s922_s7  ;;  %s1517_s26 = smov 512  }
 0x280   : > { %p1837_p11 = scmp.ne.s32.totalorder %s1832_s23, 0  ;;  %s1518_s14 = smov 1024  }
 0x281   : > { %s1519_s15 = smov 4   ;;  %s1520_s16 = smov 128  }
 0x282   : > { %1294 = sst [smem:[#allocation10]] (%p1837_p11), %s1517_s26  ;;  %s1521_s22 = smov 8  }
 0x283   : > { %1295 = sst [smem:[#allocation10 + $0x1]] (%p1837_p11), %s1518_s14  ;;  %s1522_s10 = smov [#allocation9]  }
 0x284   : > { %1296 = sst [smem:[#allocation10 + $0x2]] (%p1837_p11), %s1519_s15  ;;  %s1523_s28 = smov 0  }
 0x285   : > { %1297 = sst [smem:[#allocation10 + $0x3]] (%p1837_p11), %s1520_s16 }
 0x286   : > { %1298 = sst [smem:[#allocation10 + $0x4]] (%p1837_p11), %s1520_s16 }
 0x287   : > { %1299 = sst [smem:[#allocation10 + $0x5]] (%p1837_p11), %s1521_s22 }
 0x288   : > { %1300 = dma.general (%p1837_p11), %s787_s6, 1536, %s769_s24, %s757_s17, %s1522_s10, [#allocation10], %s1523_s28, 0  }
 0x289 PF: > { %s814_s12 = sand.u32 1, %s1498_s18   ;;  %p1838_p0 = scmp.ne.s32.totalorder %s1828_s25, 0 }
 0x28a   : > { %p1839_p2 = scmp.ge.s32.totalorder %s1510_s21, 2  ;;  %s815_s13 = scalar_lea.sflag [#allocation4], %s814_s12 }
 0x28c   : > { %p1314_p3 = pnand %p1839_p2, %p1838_p0 }
 0x28e   : > { %1493 = dma.done.wait (!%p1314_p3), %s815_s13, 1536  }
 0x28f   : > { %1495 = vsyncadd (!%p1314_p3), %s815_s13, 4294965760  ;;  %p19_p7 = scmp.ge.s32.totalorder %s1670_s29, 4   ;;  %s1840_s18 = smov %s1502_s19 }
 0x290   : > { %s1841_s19 = smov %s1506_s20  ;;  %s1842_s20 = smov %s1686_s27 }
 0x291   : > { %s1843_s21 = smov %s1670_s29  ;;  %21 = sbr.rel (!%p19_p7) target bundleno = 6 (0x6), region = 104 }
 0x298   :  { %820 = vsyncpa [#allocation3], 1 }
 0x299   :  { %822 = vsyncpa [#allocation3 + $0x1], 1 }
 0x29a   :  { %823 = vsyncpa [#allocation6], 1 }
 0x29b   :  { %824 = vsyncpa [#allocation4], 1 }
 0x29c   :  { %826 = vsyncpa [#allocation4 + $0x1], 1 }

</bundles_post_ra>
